<compile_context>
chip_gen: v7x
topology: tpu7x:2x2x1
jax: 0.10.0
libtpu: 0.0.40
codegen_flags: <defaults>
</compile_context>

<pallas_src>
import functools

import jax
import jax.numpy as jnp
from jax.experimental import pallas as pl
from jax.experimental.pallas import tpu as pltpu

LANE = 128


def _wmse_kernel(out_ref, tgt_ref, w_ref, partial_ref, *, rows_total, block_rows):
    i = pl.program_id(0)

    o = out_ref[...].astype(jnp.float32)
    t = tgt_ref[...].astype(jnp.float32)
    w = w_ref[...].astype(jnp.float32)

    # Row-validity mask for the (possibly partial) tail tile.  Out-of-bounds
    # rows of a partial block may contain garbage; jnp.where discards it.
    row_ids = i * block_rows + jax.lax.broadcasted_iota(
        jnp.int32, (block_rows, 1), 0)
    valid = row_ids < rows_total                         # (block_rows, 1)

    diff = o - t
    se = jnp.where(valid, diff * diff * w, 0.0)          # weighted squared error
    w_valid = jnp.where(valid, w, 0.0)                   # for weight.sum()
    cnt = jnp.where(valid & (w > 0.0), 1.0, 0.0)         # for (weight > 0).sum()

    # Reduce only along the sublane (row) axis here; the tiny cross-lane
    # reduction over (grid, 3, 128) happens once in the JAX wrapper.
    stacked = jnp.concatenate(
        [
            jnp.sum(se, axis=0, keepdims=True),
            jnp.sum(w_valid, axis=0, keepdims=True),
            jnp.sum(cnt, axis=0, keepdims=True),
        ],
        axis=0,
    )                                                    # (3, 128)
    partial_ref[0] = stacked


@functools.partial(jax.jit, static_argnames=("tile_rows",))
def weighted_mse_loss(out, target, weight, *, tile_rows=2048):
    """Forward pass of Weighted_MSELoss. out/target/weight: same shape."""
    if weight.shape != out.shape:
        # TODO(synk): PyTorch computes weight.sum()/(weight>0).sum() on the
        # un-broadcast weight; we match the common same-shape usage and
        # broadcast here only as a fallback.
        weight = jnp.broadcast_to(weight, out.shape)

    total = out.size
    out_f = out.reshape(-1)
    tgt_f = target.reshape(-1)
    w_f = weight.reshape(-1)

    # Only pad to the next multiple of 128 lanes (<128 elements, rare path).
    # Zero padding contributes 0 to all three sums (weight pad == 0).
    rem = total % LANE
    if rem:
        pad = LANE - rem
        out_f = jnp.pad(out_f, (0, pad))
        tgt_f = jnp.pad(tgt_f, (0, pad))
        w_f = jnp.pad(w_f, (0, pad))

    rows = out_f.size // LANE
    out2 = out_f.reshape(rows, LANE)
    tgt2 = tgt_f.reshape(rows, LANE)
    w2 = w_f.reshape(rows, LANE)

    # Block sizing: big streaming tiles; fall back to the full array when it
    # is smaller than one tile (block equal to full dims is always legal).
    block_rows = min(tile_rows, rows)
    if block_rows != rows:
        block_rows = max(8, (block_rows // 8) * 8)
    grid_steps = pl.cdiv(rows, block_rows)

    kernel = functools.partial(
        _wmse_kernel, rows_total=rows, block_rows=block_rows)

    in_spec = pl.BlockSpec((block_rows, LANE), lambda i: (i, 0))
    out_spec = pl.BlockSpec((1, 3, LANE), lambda i: (i, 0, 0))

    partials = pl.pallas_call(
        kernel,
        out_shape=jax.ShapeDtypeStruct((grid_steps, 3, LANE), jnp.float32),
        grid=(grid_steps,),
        in_specs=[in_spec, in_spec, in_spec],
        out_specs=out_spec,
        compiler_params=pltpu.CompilerParams(
            # No carried state -> fully parallel grid (uses both TCs on v7x).
            dimension_semantics=("parallel",),
        ),
    )(out2, tgt2, w2)

    sums = jnp.sum(partials, axis=(0, 2))   # (3,): [loss_sum, w_sum, cnt_pos]
    loss_sum, w_sum, cnt_pos = sums[0], sums[1], sums[2]
    # Mirrors PyTorch: divide when weight.sum() > 0, else loss.sum() * 0.
    return jnp.where(w_sum > 0.0, loss_sum / cnt_pos, loss_sum * 0.0)


def _ref_wmse(out, target, weight):
    out = out.astype(jnp.float32)
    target = target.astype(jnp.float32)
    weight = jnp.broadcast_to(weight.astype(jnp.float32), out.shape)
    loss = (out - target) ** 2 * weight
    w_sum = weight.sum()
    cnt = (weight > 0).astype(jnp.float32).sum()
    return jnp.where(w_sum > 0.0, loss.sum() / cnt, loss.sum() * 0.0)


if __name__ == "__main__":
    key = jax.random.PRNGKey(0)
    k1, k2, k3, k4 = jax.random.split(key, 4)

    # Center-map style inputs.
    B, C, H, W = 2, 4, 16, 16
    out = jax.random.normal(k1, (B, C, H, W), jnp.float32)
    target = jax.random.normal(k2, (B, C, H, W), jnp.float32)
    w_raw = jax.random.uniform(k3, (B, C, H, W), jnp.float32)
    weight = jnp.where(jax.random.uniform(k4, (B, C, H, W)) > 0.6, w_raw, 0.0)

    loss = jax.block_until_ready(weighted_mse_loss(out, target, weight))
    ref = _ref_wmse(out, target, weight)
    assert jnp.allclose(loss, ref, rtol=1e-5, atol=1e-5), (loss, ref)

    # Exercise the non-multiple-of-128 + partial-tile masking path
    # (3*5*20*20 = 6000 elems -> 47 rows, tile_rows=16 -> 3 steps, ragged tail).
    out2 = jax.random.normal(k1, (3, 5, 20, 20), jnp.float32)
    tgt2 = jax.random.normal(k2, (3, 5, 20, 20), jnp.float32)
    wgt2 = jnp.where(jax.random.uniform(k3, (3, 5, 20, 20)) > 0.5,
                     jax.random.uniform(k4, (3, 5, 20, 20), jnp.float32), 0.0)
    loss2 = jax.block_until_ready(
        weighted_mse_loss(out2, tgt2, wgt2, tile_rows=16))
    ref2 = _ref_wmse(out2, tgt2, wgt2)
    assert jnp.allclose(loss2, ref2, rtol=1e-5, atol=1e-5), (loss2, ref2)

    # All-zero weight branch -> loss must be exactly 0.
    loss3 = jax.block_until_ready(
        weighted_mse_loss(out, target, jnp.zeros_like(weight)))
    assert jnp.allclose(loss3, 0.0), loss3

    print("KERNEL_OK")
</pallas_src>

<mosaic_0001>
module attributes {stable_mosaic.version = 11 : i64} {
  func.func @_wmse_kernel(%arg0: i32, %arg1: memref<16x128xf32, #tpu.memory_space<vmem>>, %arg2: memref<16x128xf32, #tpu.memory_space<vmem>>, %arg3: memref<16x128xf32, #tpu.memory_space<vmem>>, %arg4: memref<1x3x128xf32, #tpu.memory_space<vmem>>) attributes {dimension_semantics = [#tpu.dimension_semantics<parallel>], iteration_bounds = array<i64: 1>, scalar_prefetch = 0 : i64, scratch_operands = 0 : i64, tpu.core_type = #tpu.core_type<tc>, window_params = [{transform_indices = @transform_0, window_bounds = array<i64: 16, 128>}, {transform_indices = @transform_1, window_bounds = array<i64: 16, 128>}, {transform_indices = @transform_2, window_bounds = array<i64: 16, 128>}, {transform_indices = @transform_3, window_bounds = array<i64: 1, 3, 128>}]} {
    %c0 = arith.constant 0 : index
    %c0_0 = arith.constant 0 : index
    %0 = vector.load %arg1[%c0, %c0_0] : memref<16x128xf32, #tpu.memory_space<vmem>>, vector<16x128xf32>
    %c0_1 = arith.constant 0 : index
    %c0_2 = arith.constant 0 : index
    %1 = vector.load %arg2[%c0_1, %c0_2] : memref<16x128xf32, #tpu.memory_space<vmem>>, vector<16x128xf32>
    %c0_3 = arith.constant 0 : index
    %c0_4 = arith.constant 0 : index
    %2 = vector.load %arg3[%c0_3, %c0_4] : memref<16x128xf32, #tpu.memory_space<vmem>>, vector<16x128xf32>
    %c16_i32 = arith.constant 16 : i32
    %3 = arith.muli %arg0, %c16_i32 : i32
    %4 = tpu.iota {dimensions = array<i32: 0>} : vector<16x1xi32>
    %5 = vector.broadcast %3 : i32 to vector<16x1xi32>
    %6 = arith.addi %5, %4 : vector<16x1xi32>
    %c16_i32_5 = arith.constant 16 : i32
    %7 = vector.broadcast %c16_i32_5 : i32 to vector<16x1xi32>
    %8 = arith.cmpi slt, %6, %7 : vector<16x1xi32>
    %9 = arith.subf %0, %1 : vector<16x128xf32>
    %10 = arith.mulf %9, %9 : vector<16x128xf32>
    %11 = arith.mulf %10, %2 : vector<16x128xf32>
    %cst = arith.constant 0.000000e+00 : f32
    %12 = vector.shape_cast %8 : vector<16x1xi1> to vector<16x1xi1>
    %13 = vector.broadcast %12 : vector<16x1xi1> to vector<16x128xi1>
    %14 = vector.broadcast %cst : f32 to vector<16x128xf32>
    %15 = arith.select %13, %11, %14 : vector<16x128xi1>, vector<16x128xf32>
    %cst_6 = arith.constant 0.000000e+00 : f32
    %16 = vector.shape_cast %8 : vector<16x1xi1> to vector<16x1xi1>
    %17 = vector.broadcast %16 : vector<16x1xi1> to vector<16x128xi1>
    %18 = vector.broadcast %cst_6 : f32 to vector<16x128xf32>
    %19 = arith.select %17, %2, %18 : vector<16x128xi1>, vector<16x128xf32>
    %cst_7 = arith.constant 0.000000e+00 : f32
    %20 = vector.broadcast %cst_7 : f32 to vector<16x128xf32>
    %21 = arith.cmpf ogt, %2, %20 : vector<16x128xf32>
    %22 = vector.broadcast %8 : vector<16x1xi1> to vector<16x128xi1>
    %23 = arith.andi %22, %21 : vector<16x128xi1>
    %cst_8 = arith.constant 1.000000e+00 : f32
    %cst_9 = arith.constant 0.000000e+00 : f32
    %24 = vector.broadcast %cst_8 : f32 to vector<16x128xf32>
    %25 = vector.broadcast %cst_9 : f32 to vector<16x128xf32>
    %26 = arith.select %23, %24, %25 : vector<16x128xi1>, vector<16x128xf32>
    %cst_10 = arith.constant dense<0.000000e+00> : vector<128xf32>
    %27 = vector.multi_reduction <add>, %15, %cst_10 [0] : vector<16x128xf32> to vector<128xf32>
    %28 = vector.shape_cast %27 : vector<128xf32> to vector<1x128xf32>
    %cst_11 = arith.constant dense<0.000000e+00> : vector<128xf32>
    %29 = vector.multi_reduction <add>, %19, %cst_11 [0] : vector<16x128xf32> to vector<128xf32>
    %30 = vector.shape_cast %29 : vector<128xf32> to vector<1x128xf32>
    %cst_12 = arith.constant dense<0.000000e+00> : vector<128xf32>
    %31 = vector.multi_reduction <add>, %26, %cst_12 [0] : vector<16x128xf32> to vector<128xf32>
    %32 = vector.shape_cast %31 : vector<128xf32> to vector<1x128xf32>
    %33 = tpu.concatenate %28, %30, %32 in 0 : vector<1x128xf32>, vector<1x128xf32>, vector<1x128xf32> -> vector<3x128xf32>
    %c0_13 = arith.constant 0 : index
    %c0_14 = arith.constant 0 : index
    %c0_15 = arith.constant 0 : index
    %34 = vector.load %arg4[%c0_13, %c0_14, %c0_15] : memref<1x3x128xf32, #tpu.memory_space<vmem>>, vector<1x3x128xf32>
    %35 = vector.shape_cast %34 : vector<1x3x128xf32> to vector<3x128xf32>
    %36 = vector.shape_cast %33 : vector<3x128xf32> to vector<1x3x128xf32>
    tpu.vector_store %arg4[%c0_13, %c0_14, %c0_15], %36 {strides = array<i32>} : memref<1x3x128xf32, #tpu.memory_space<vmem>>, vector<1x3x128xf32>,
    return
  }
  func.func @transform_0(%arg0: i32) -> (i32, i32) {
    %c0_i32 = arith.constant 0 : i32
    %c0_i32_0 = arith.constant 0 : i32
    return %arg0, %c0_i32 : i32, i32
  }
  func.func @transform_1(%arg0: i32) -> (i32, i32) {
    %c0_i32 = arith.constant 0 : i32
    %c0_i32_0 = arith.constant 0 : i32
    return %arg0, %c0_i32 : i32, i32
  }
  func.func @transform_2(%arg0: i32) -> (i32, i32) {
    %c0_i32 = arith.constant 0 : i32
    %c0_i32_0 = arith.constant 0 : i32
    return %arg0, %c0_i32 : i32, i32
  }
  func.func @transform_3(%arg0: i32) -> (i32, i32, i32) {
    %c0_i32 = arith.constant 0 : i32
    %c0_i32_0 = arith.constant 0 : i32
    %c0_i32_1 = arith.constant 0 : i32
    return %arg0, %c0_i32, %c0_i32_0 : i32, i32, i32
  }
}

</mosaic_0001>

<bundles_post_ra>
// kernel: weighted_mse_loss.1
= control target key start
LH: loop header
LB: loop body
LE: loop exit
PB: predicated region body
PF: predicated region fallthrough
CT: control target
= control target key end

     0   :  { %v80_v10 = vmov 0.0   ;;  %vm70_vm2 = vcmask 1040384   ;;  %vm72_vm3 = vcmask 1041408   ;;  %s122_s0 = inlined_call_operand.vmem [shape: f32[16,128], index: 0, kind: input, shape index: {}]   ;;  %s123_s1 = inlined_call_operand.vmem [shape: f32[16,128], index: 1, kind: input, shape index: {}]   ;;  %s124_s2 = inlined_call_operand.vmem [shape: f32[16,128], index: 2, kind: input, shape index: {}]   ;;  %s125_s3 = inlined_call_operand.vmem [shape: f32[1,3,128], index: 3, kind: output, shape index: {}]  }
   0x1   :  { %v14_v0 = vld [vmem:[%s122_s0] sm:$0xff]  ;;  %v15_v1 = vld [vmem:[%s122_s0 + $0x8] sm:$0xff] }
   0x2   :  { %v16_v2 = vld [vmem:[%s123_s1] sm:$0xff]  ;;  %v17_v3 = vld [vmem:[%s123_s1 + $0x8] sm:$0xff] }
   0x3   :  { %v18_v4 = vld [vmem:[%s124_s2] sm:$0xff]  ;;  %v19_v5 = vld [vmem:[%s124_s2 + $0x8] sm:$0xff]  ;;  %v29_v6 = vsub.f32 %v14_v0, %v16_v2  ;;  %v30_v7 = vsub.f32 %v15_v1, %v17_v3 }
   0x4   :  { %vm43_vm0 = vcmp.gt.f32.partialorder %v18_v4, 0.0  ;;  %vm44_vm1 = vcmp.gt.f32.partialorder %v19_v5, 0.0  ;;  %v56_v8 = vadd.f32 %v19_v5, %v18_v4 }
   0x5   :  { %v31_v9 = vmul.f32 %v29_v6, %v29_v6  ;;  %v47_v11 = vsel %vm43_vm0, 1.0, %v80_v10  ;;  %v48_v12 = vsel %vm44_vm1, 1.0, %v80_v10  ;;  %v32_v13 = vmul.f32 %v30_v7, %v30_v7 }
   0x6   :  { %v57_v14 = vrot.slane %v56_v8, 4  ;;  %v63_v15 = vadd.f32 %v48_v12, %v47_v11 }
   0x7   :  { %v33_v16 = vmul.f32 %v31_v9, %v18_v4  ;;  %v34_v17 = vmul.f32 %v32_v13, %v19_v5 }
   0x8   :  { %v58_v18 = vadd.f32 %v57_v14, %v56_v8  ;;  %v64_v19 = vrot.slane %v63_v15, 4 }
   0x9   :  { %v49_v20 = vadd.f32 %v34_v17, %v33_v16 }
   0xa   :  { %v59_v21 = vrot.slane %v58_v18, 2  ;;  %v65_v22 = vadd.f32 %v64_v19, %v63_v15 }
   0xb   :  { %v50_v23 = vrot.slane %v49_v20, 4 }
   0xc   :  { %v60_v24 = vadd.f32 %v59_v21, %v58_v18  ;;  %v66_v25 = vrot.slane %v65_v22, 2 }
   0xd   :  { %v51_v26 = vadd.f32 %v50_v23, %v49_v20 }
   0xe   :  { %v67_v27 = vadd.f32 %v66_v25, %v65_v22  ;;  %v61_v29 = vrot.slane %v60_v24, 1 }
   0xf   :  { %v52_v28 = vrot.slane %v51_v26, 2 }
  0x10   :  { %v68_v30 = vrot.slane %v67_v27, 1  ;;  %v62_v33 = vadd.f32 %v61_v29, %v60_v24 }
  0x11   :  { %v53_v31 = vadd.f32 %v52_v28, %v51_v26 }
  0x12   :  { %v69_v34 = vadd.f32 %v68_v30, %v67_v27 }
  0x13   :  { %v54_v32 = vrot.slane %v53_v31, 1 }
  0x15   :  { %v55_v35 = vadd.f32 %v54_v32, %v53_v31 }
  0x17   :  { %v71_v36 = vsel %vm70_vm2, %v55_v35, %v62_v33 }
  0x18   :  { %v73_v37 = vsel %vm72_vm3, %v71_v36, %v69_v34 }
  0x19   :  { %74 = vst [vmem:[%s125_s3] sm:$0x7] %v73_v37 }

</bundles_post_ra>
